<compile_context>
chip_gen: v7x
topology: tpu7x:2x2x1
jax: 0.10.0
libtpu: 0.0.40
codegen_flags: <defaults>
</compile_context>

<pallas_src>
import math

import jax
import jax.numpy as jnp
from jax import lax
from jax.experimental import pallas as pl
from jax.experimental.pallas import tpu as pltpu


def rotation_kernel(psT_ref, q_ref, x_ref, o_ref):
    """psT_ref: VMEM (2, F)   softmax(P).T          (grid-invariant, fetched once)
       q_ref  : VMEM (2, F)   (R2 - I2).T @ p.T     (grid-invariant, fetched once)
       x_ref  : VMEM (tm, F)  input batch tile
       o_ref  : VMEM (tm, F)  output batch tile
    """
    x = x_ref[...].astype(jnp.float32)                              # (tm, F)

    # u = x @ p : contract the feature axis against psT's lane axis (MXU, K=F).
    u = lax.dot_general(x, psT_ref[...], (((1,), (1,)), ((), ())),
                        preferred_element_type=jnp.float32)         # (tm, 2)

    # Rank-2 expansion on the MXU (K=2, natural (K, N) layout for q):
    #   out = x + u @ Q   (identity term of R folded into the "+ x").
    upd = jnp.dot(u, q_ref[...],
                  preferred_element_type=jnp.float32)               # (tm, F)

    o_ref[...] = (x + upd).astype(o_ref.dtype)


def _choose_tiling(B, F_pad):
    """Pick a batch tile tm and the padded batch extent B_pad."""
    # Budget double-buffered fp32 in+out tiles (2 bufs each => 16 B/elem) to
    # ~24 MiB so we stay well inside v7x's smaller scoped VMEM.
    budget = 24 * 1024 * 1024
    tm_cap = max(8, (budget // (16 * F_pad)) // 8 * 8)
    tm = min(512, tm_cap)
    if B <= tm:
        b_pad = -(-B // 8) * 8               # pad batch to a sublane multiple
        tm = b_pad
        # Prefer >=2 grid steps so the "parallel" batch axis can shard across
        # both TensorCores on multi-core parts.
        if tm >= 256 and (tm // 2) % 8 == 0:
            tm //= 2
        return tm, b_pad
    b_pad = -(-B // tm) * tm
    return tm, b_pad


def rotation_forward(x, p, theta):
    """x: (B, F); p: (F, 2) f32 parameter; theta: (1, 1) f32 parameter."""
    B, F_ = x.shape
    assert p.shape == (F_, 2) and theta.shape == (1, 1)

    # ---- grid-invariant precompute (tiny; once per call, not per tile) ------
    ps = jax.nn.softmax(p.astype(jnp.float32), axis=0)              # (F, 2)
    t = theta[0, 0].astype(jnp.float32)
    c, s = jnp.cos(t), jnp.sin(t)
    # A = R2 - I2 = [[c-1, -s], [s, c-1]];  Q = A.T @ p.T
    a_t = jnp.stack([jnp.stack([c - 1.0, s]),
                     jnp.stack([-s, c - 1.0])])                     # A.T (2, 2)
    psT = ps.T                                                      # (2, F) lane-dense
    q = a_t @ psT                                                   # (2, F) lane-dense

    # ---- padding: lane-dense (multiple-of-128) features, tileable batch -----
    F_pad = -(-F_ // 128) * 128
    tm, B_pad = _choose_tiling(B, F_pad)
    if F_pad != F_:
        psT = jnp.pad(psT, ((0, 0), (0, F_pad - F_)))
        q = jnp.pad(q, ((0, 0), (0, F_pad - F_)))
    x_in = x
    if (B_pad, F_pad) != (B, F_):
        x_in = jnp.pad(x, ((0, B_pad - B), (0, F_pad - F_)))

    grid = (B_pad // tm,)
    # Double-buffered fp32 in+out tiles + two sublane-padded (8, F_pad) slabs.
    needed = 16 * tm * F_pad + 128 * F_pad + (2 << 20)
    vmem_limit = int(min(max(needed, 32 << 20), 48 << 20))

    out = pl.pallas_call(
        rotation_kernel,
        out_shape=jax.ShapeDtypeStruct((B_pad, F_pad), x.dtype),
        grid=grid,
        in_specs=[
            pl.BlockSpec((2, F_pad), lambda i: (0, 0)),    # softmax(P).T, constant block
            pl.BlockSpec((2, F_pad), lambda i: (0, 0)),    # Q, constant block
            pl.BlockSpec((tm, F_pad), lambda i: (i, 0)),   # x batch tile
        ],
        out_specs=pl.BlockSpec((tm, F_pad), lambda i: (i, 0)),
        compiler_params=pltpu.CompilerParams(
            dimension_semantics=("parallel",),
            vmem_limit_bytes=vmem_limit),
    )(psT, q, x_in)

    if (B_pad, F_pad) != (B, F_):
        out = out[:B, :F_]
    return out


if __name__ == "__main__":
    B, F_ = 256, 128
    key = jax.random.PRNGKey(0)
    k1, k2, k3 = jax.random.split(key, 3)

    # Deterministic init matching nn.init.kaiming_uniform_(a=sqrt(5)):
    #   gain = sqrt(2/(1+5)) = sqrt(1/3); bound = gain * sqrt(3 / fan_in)
    #   theta (1,1): fan_in=1 -> bound = 1.0
    #   p (F,2)   : fan_in=2 -> bound = sqrt(1/2)
    theta = jax.random.uniform(k1, (1, 1), jnp.float32, -1.0, 1.0)
    bound_p = math.sqrt(0.5)
    p = jax.random.uniform(k2, (F_, 2), jnp.float32, -bound_p, bound_p)
    x = jax.random.normal(k3, (B, F_), jnp.float32)

    fwd = jax.jit(rotation_forward)   # fuses the tiny wrapper-side precompute
    out = fwd(x, p, theta)
    out = jax.block_until_ready(out)

    # pure-JAX reference mirroring the PyTorch forward exactly
    ps = jax.nn.softmax(p, axis=0)
    c, s = jnp.cos(theta[0, 0]), jnp.sin(theta[0, 0])
    R2 = jnp.stack([jnp.stack([c, -s]), jnp.stack([s, c])])
    R = (jnp.eye(F_, dtype=jnp.float32)
         + ps @ (R2 - jnp.eye(2, dtype=jnp.float32)) @ ps.T)
    ref = x @ R.T

    assert out.shape == (B, F_) and out.dtype == x.dtype
    assert jnp.allclose(out, ref, atol=1e-4, rtol=1e-4), "kernel/reference mismatch"

    print("KERNEL_OK")
</pallas_src>

<mosaic_0001>
module attributes {stable_mosaic.version = 11 : i64} {
  func.func @rotation_kernel(%arg0: i32, %arg1: memref<2x128xf32, #tpu.memory_space<vmem>>, %arg2: memref<2x128xf32, #tpu.memory_space<vmem>>, %arg3: memref<128x128xf32, #tpu.memory_space<vmem>>, %arg4: memref<128x128xf32, #tpu.memory_space<vmem>>) attributes {dimension_semantics = [#tpu.dimension_semantics<parallel>], iteration_bounds = array<i64: 2>, scalar_prefetch = 0 : i64, scratch_operands = 0 : i64, tpu.core_type = #tpu.core_type<tc>, window_params = [{pipeline_mode = #tpu.pipeline_mode<synchronous>, transform_indices = @transform_0, window_bounds = array<i64: 2, 128>}, {pipeline_mode = #tpu.pipeline_mode<synchronous>, transform_indices = @transform_1, window_bounds = array<i64: 2, 128>}, {transform_indices = @transform_2, window_bounds = array<i64: 128, 128>}, {transform_indices = @transform_3, window_bounds = array<i64: 128, 128>}]} {
    %c0 = arith.constant 0 : index
    %c0_0 = arith.constant 0 : index
    %0 = vector.load %arg3[%c0, %c0_0] : memref<128x128xf32, #tpu.memory_space<vmem>>, vector<128x128xf32>
    %c0_1 = arith.constant 0 : index
    %c0_2 = arith.constant 0 : index
    %1 = vector.load %arg1[%c0_1, %c0_2] : memref<2x128xf32, #tpu.memory_space<vmem>>, vector<2x128xf32>
    %cst = arith.constant dense<0.000000e+00> : vector<128x2xf32>
    %2 = tpu.matmul %0, %1, %cst {dimension_numbers = #tpu.dot_dimension_numbers<[1], [1], [0], [0], [0, 0, 1, 0], [], []>} : vector<128x128xf32>, vector<2x128xf32>, vector<128x2xf32> -> vector<128x2xf32>
    %c0_3 = arith.constant 0 : index
    %c0_4 = arith.constant 0 : index
    %3 = vector.load %arg2[%c0_3, %c0_4] : memref<2x128xf32, #tpu.memory_space<vmem>>, vector<2x128xf32>
    %cst_5 = arith.constant dense<0.000000e+00> : vector<128x128xf32>
    %4 = tpu.matmul %2, %3, %cst_5 {dimension_numbers = #tpu.dot_dimension_numbers<[1], [0], [0], [1], [0, 0, 1, 1], [], []>} : vector<128x2xf32>, vector<2x128xf32>, vector<128x128xf32> -> vector<128x128xf32>
    %5 = arith.addf %0, %4 : vector<128x128xf32>
    %c0_6 = arith.constant 0 : index
    %c0_7 = arith.constant 0 : index
    %6 = vector.load %arg4[%c0_6, %c0_7] : memref<128x128xf32, #tpu.memory_space<vmem>>, vector<128x128xf32>
    tpu.vector_store %arg4[%c0_6, %c0_7], %5 {strides = array<i32>} : memref<128x128xf32, #tpu.memory_space<vmem>>, vector<128x128xf32>,
    return
  }
  func.func @transform_0(%arg0: i32) -> (i32, i32) {
    %c0_i32 = arith.constant 0 : i32
    %c0_i32_0 = arith.constant 0 : i32
    %c0_i32_1 = arith.constant 0 : i32
    return %c0_i32, %c0_i32_0 : i32, i32
  }
  func.func @transform_1(%arg0: i32) -> (i32, i32) {
    %c0_i32 = arith.constant 0 : i32
    %c0_i32_0 = arith.constant 0 : i32
    %c0_i32_1 = arith.constant 0 : i32
    return %c0_i32, %c0_i32_0 : i32, i32
  }
  func.func @transform_2(%arg0: i32) -> (i32, i32) {
    %c0_i32 = arith.constant 0 : i32
    %c0_i32_0 = arith.constant 0 : i32
    return %arg0, %c0_i32 : i32, i32
  }
  func.func @transform_3(%arg0: i32) -> (i32, i32) {
    %c0_i32 = arith.constant 0 : i32
    %c0_i32_0 = arith.constant 0 : i32
    return %arg0, %c0_i32 : i32, i32
  }
}

</mosaic_0001>

<bundles_post_ra>
// kernel: rotation_forward.1
= control target key start
LH: loop header
LB: loop body
LE: loop exit
PB: predicated region body
PF: predicated region fallthrough
CT: control target
= control target key end

     0   :  { %8 = vsyncpa [#allocation3], 0  ;;  %s1114_s0 = inlined_call_operand.vmem [shape: f32[2,128], index: 0, kind: input, shape index: {}]   ;;  %s1115_s1 = inlined_call_operand.vmem [shape: f32[2,128], index: 1, kind: input, shape index: {}]   ;;  %s1116_s2 = inlined_call_operand.vmem [shape: f32[256,128], index: 2, kind: input, shape index: {}]   ;;  %s1117_s3 = inlined_call_operand.hbm [shape: f32[256,128], index: 3, kind: output, shape index: {}]  }
   0x1   :  { %10 = vsyncpa [#allocation3 + $0x1], 0  ;;  %s885_s12 = smov 0   ;;  %s887_s13 = smov 0  }
   0x2   :  { %s889_s14 = smov 0   ;;  %s891_s15 = smov 0  }
   0x3 LB: > { %s906_s16 = sadd.s32 4294967295, %s860_s15   ;;  %s641_s17 = sadd.s32 4294967294, %s860_s15   ;;  %s860_s15 = sphi %s891_s15, %s1123_s15   ;;  %s856_s14 = sphi %s889_s14, %s1122_s14   ;;  %s852_s13 = sphi %s887_s13, %s1121_s13   ;;  %s848_s12 = sphi %s885_s12, %s1120_s12  }
   0x4   : > { %s910_s18 = sadd.s32 1, %s860_s15   ;;  %s91_s19 = sadd.s32 1, %s856_s14 }
   0x5   : > { %s88_s20 = ssub.s32 %s860_s15, %s910_s18  ;;  %p101_p0 = scmp.ne.s32.totalorder %s856_s14, %s852_s13 }
   0x6   : > { %p89_p1 = scmp.eq.s32.totalorder %s88_s20, 0  ;;  %p102_p2 = scmp.eq.s32.totalorder %s906_s16, 1 }
   0x7   : > { %p107_p3 = scmp.ne.s32.totalorder %s852_s13, %s848_s12  ;;  %p108_p4 = scmp.eq.s32.totalorder %s641_s17, 1 }
   0x8   : > { %s921_s21 = scalar_select %p89_p1, %s856_s14, %s91_s19  }
   0x9   : > { %p923_p5 = por %p102_p2, %p101_p0  ;;  %p927_p6 = por %p108_p4, %p107_p3 }
   0xa   : > { %p644_p7 = scmp.ge.s32.totalorder %s860_s15, 1  ;;  %p141_p8 = scmp.lt.s32.totalorder %s860_s15, 3 }
   0xc   : > { %p142_p9 = pnand %p644_p7, %p141_p8 }
   0xd   : > { %v188_v0 = vld [vmem:[%s1114_s0] sm:$0x3] (!%p142_p9)  ;;  %s646_s26 = sshll.u32 (!%p142_p9), %s906_s16, 4  ;;  %vm384_vm0 = vcmask (!%p142_p9), 1041408   ;;  %vm335_vm1 = vcmask (!%p142_p9), 15360   ;;  %s162_s6 = sand.u32 (!%p142_p9), 1, %s852_s13  }
   0xe   : > { %145 = sbr.rel (%p142_p9) target bundleno = 498 (0x1f2), region = 32  ;;  %705 = vmatprep.subr.mxu0 (!%p142_p9), %v188_v0  ;;  %p166_p10 = scmp.lt.s32.totalorder (!%p142_p9), %s646_s26, 31  ;;  %v334_v17 = vld [vmem:[%s1115_s1] sm:$0x3] (!%p142_p9) }
   0xf   : > { %706 = vmatpush3.xpose.msra.mxu0 (!%p142_p9), %v188_v0  ;;  %731 = vmatprep.subr.msk.mxu1 (!%p142_p9), %vm384_vm0, %v334_v17  ;;  %s645_s7 = sshll.u32 (!%p142_p9), %s162_s6, 7  ;;  %s670_s9 = sshll.u32 (!%p142_p9), %s906_s16, 11 }
  0x10   : > { %732 = vmatpush3.msk.msra.mxu1 (!%p142_p9), %vm384_vm0, %v334_v17  ;;  %s1030_s8 = scalar_lea.vmem (!%p142_p9), [#allocation2], %s645_s7  ;;  %s1064_s19 = scalar_lea.hbm (!%p142_p9), %s1117_s3, %s670_s9 }
  0x11   : > { %s579_s10 = sshll.u32 (!%p142_p9), %s1030_s8, 4  ;;  %s1073_s16 = scalar_lea.sflag (!%p142_p9), [#allocation3], %s162_s6  ;;  %s1066_s10 = int_to_ptr.vmem [resolvable:$true] %s579_s10 }
  0x12   : > { %s798_s20 = scalar_lea.vmem (!%p142_p9), %s1066_s10, 2048  ;;  %s862_s24 = smov (!%p142_p9), [#allocation2]  }
  0x13   : > { %p799_p11 = scmp.ne.s32.totalorder (!%p142_p9), %s1066_s10, %s798_s20  ;;  %s802_s25 = sshll.u32 (!%p142_p9), %s862_s24, 4  ;;  %s803_s25 = int_to_ptr.vmem [resolvable:$false] %s802_s25 }
  0x14   : > { %p805_p0 = scmp.lt.s32.totalorder (!%p142_p9), %s1066_s10, %s803_s25 }
  0x15   : > { %s1125_s26 = smov (!%p166_p10, %s646_s26), 31  ;;  %p800_p12 = pnand %p799_p11, %p923_p5 }
  0x16   : > { %s647_s27 = sshll.u32 %s1125_s26, 3  ;;  %s804_s26 = scalar_lea.vmem %s803_s25, 4096 }
  0x17   : > { %s940_s30 = scalar_lea.vmem %s1116_s2, %s647_s27  ;;  %p801_p13 = pneg %p800_p12 }
  0x18   : > { %v943_v1 = vld [vmem:[%s940_s30] sm:$0xff]  ;;  %v946_v2 = vld [vmem:[%s940_s30 + $0x8] sm:$0xff]  ;;  %v949_v3 = vld [vmem:[%s940_s30 + $0x10] sm:$0xff]  ;;  %p806_p1 = scmp.lt.s32.totalorder %s804_s26, %s798_s20 }
  0x19   : > { %707 = vmatprep.mubr.f32.mxu0 %v943_v1  ;;  %v955_v4 = vld [vmem:[%s940_s30 + $0x18] sm:$0xff]  ;;  %v958_v5 = vld [vmem:[%s940_s30 + $0x20] sm:$0xff]  ;;  %v963_v6 = vld [vmem:[%s940_s30 + $0x28] sm:$0xff] }
  0x1a   : > { %708 = vmatmul.mubr.f32.vlgmr.msra.gmra.mrb[0].mxu0 %v946_v2  ;;  %v966_v7 = vld [vmem:[%s940_s30 + $0x30] sm:$0xff]  ;;  %v971_v8 = vld [vmem:[%s940_s30 + $0x38] sm:$0xff]  ;;  %v974_v9 = vld [vmem:[%s940_s30 + $0x40] sm:$0xff]  ;;  %p807_p2 = por %p806_p1, %p805_p0 }
  0x1b   : > { %710 = vmatprep.mubr.f32.mxu0 %v949_v3  ;;  %v979_v10 = vld [vmem:[%s940_s30 + $0x48] sm:$0xff]  ;;  %v982_v11 = vld [vmem:[%s940_s30 + $0x50] sm:$0xff]  ;;  %v987_v12 = vld [vmem:[%s940_s30 + $0x58] sm:$0xff] }
  0x1c   : > { %v990_v13 = vld [vmem:[%s940_s30 + $0x60] sm:$0xff]  ;;  %v995_v14 = vld [vmem:[%s940_s30 + $0x68] sm:$0xff]  ;;  %v998_v15 = vld [vmem:[%s940_s30 + $0x70] sm:$0xff]  ;;  %p808_p3 = pnand %p807_p2, %p801_p13 }
  0x1d   : > { %v1003_v16 = vld [vmem:[%s940_s30 + $0x78] sm:$0xff] }
  0x1e   : > { %711 = vmatmul.mubr.f32.gmra.mrb[2].mxu0 %v955_v4 }
  0x1f   : > { %713 = vmatprep.mubr.f32.mxu0 %v958_v5 }
  0x22   : > { %714 = vmatmul.mubr.f32.gmra.mrb[4].mxu0 %v963_v6 }
  0x23   : > { %716 = vmatprep.mubr.f32.mxu0 %v966_v7 }
  0x26   : > { %717 = vmatmul.mubr.f32.gmra.mrb[6].mxu0 %v971_v8 }
  0x27   : > { %719 = vmatprep.mubr.f32.mxu0 %v974_v9 }
  0x2a   : > { %720 = vmatmul.mubr.f32.gmra.mrb[8].mxu0 %v979_v10 }
  0x2b   : > { %722 = vmatprep.mubr.f32.mxu0 %v982_v11 }
  0x2e   : > { %723 = vmatmul.mubr.f32.gmra.mrb[10].mxu0 %v987_v12 }
  0x2f   : > { %725 = vmatprep.mubr.f32.mxu0 %v990_v13 }
  0x32   : > { %726 = vmatmul.mubr.f32.gmra.mrb[12].mxu0 %v995_v14 }
  0x33   : > { %728 = vmatprep.mubr.f32.mxu0 %v998_v15 }
  0x36   : > { %729 = vmatmul.mubr.f32.gmra.mrb[14].mxu0 %v1003_v16 }
  0xed   : > { %v709_v18 = vpop.f32.mrb[0].mxu0 }
  0xee   : > { %v255_v19 = vpop.f32.mrb[1].mxu0 }
  0xef   : > { %733 = vmatprep.mubr.msk.f32.mxu1 %vm335_vm1, %v255_v19 }
  0xf0   : > { %734 = vmatmul.mubr.msk.f32.vlgmr.msra.gmra.mrb[0].mxu1 %vm335_vm1, %v709_v18 }
  0xf1   : > { %v712_v20 = vpop.f32.mrb[2].mxu0 }
  0xf2   : > { %v265_v21 = vpop.f32.mrb[3].mxu0 }
  0xf3   : > { %736 = vmatprep.mubr.msk.f32.mxu1 %vm335_vm1, %v265_v21 }
  0xf4   : > { %737 = vmatmul.mubr.msk.f32.gmra.mrb[2].mxu1 %vm335_vm1, %v712_v20 }
  0xf5   : > { %v715_v22 = vpop.f32.mrb[4].mxu0 }
  0xf6   : > { %v275_v23 = vpop.f32.mrb[5].mxu0 }
  0xf7   : > { %739 = vmatprep.mubr.msk.f32.mxu1 %vm335_vm1, %v275_v23 }
  0xf8   : > { %740 = vmatmul.mubr.msk.f32.gmra.mrb[4].mxu1 %vm335_vm1, %v715_v22 }
  0xf9   : > { %v718_v24 = vpop.f32.mrb[6].mxu0 }
  0xfa   : > { %v285_v25 = vpop.f32.mrb[7].mxu0 }
  0xfb   : > { %742 = vmatprep.mubr.msk.f32.mxu1 %vm335_vm1, %v285_v25 }
  0xfc   : > { %743 = vmatmul.mubr.msk.f32.gmra.mrb[6].mxu1 %vm335_vm1, %v718_v24 }
  0xfd   : > { %v721_v26 = vpop.f32.mrb[8].mxu0 }
  0xfe   : > { %v295_v27 = vpop.f32.mrb[9].mxu0 }
  0xff   : > { %745 = vmatprep.mubr.msk.f32.mxu1 %vm335_vm1, %v295_v27 }
 0x100   : > { %746 = vmatmul.mubr.msk.f32.gmra.mrb[8].mxu1 %vm335_vm1, %v721_v26 }
 0x101   : > { %v724_v28 = vpop.f32.mrb[10].mxu0 }
 0x102   : > { %v305_v29 = vpop.f32.mrb[11].mxu0 }
 0x103   : > { %748 = vmatprep.mubr.msk.f32.mxu1 %vm335_vm1, %v305_v29 }
 0x104   : > { %749 = vmatmul.mubr.msk.f32.gmra.mrb[10].mxu1 %vm335_vm1, %v724_v28 }
 0x105   : > { %v727_v30 = vpop.f32.mrb[12].mxu0 }
 0x106   : > { %v315_v31 = vpop.f32.mrb[13].mxu0 }
 0x107   : > { %751 = vmatprep.mubr.msk.f32.mxu1 %vm335_vm1, %v315_v31 }
 0x108   : > { %752 = vmatmul.mubr.msk.f32.gmra.mrb[12].mxu1 %vm335_vm1, %v727_v30 }
 0x109   : > { %v730_v32 = vpop.f32.mrb[14].mxu0 }
 0x10a   : > { %v325_v33 = vpop.f32.mrb[15].mxu0 }
 0x10b   : > { %754 = vmatprep.mubr.msk.f32.mxu1 %vm335_vm1, %v325_v33 }
 0x10c   : > { %755 = vmatmul.mubr.msk.f32.gmra.mrb[14].mxu1 %vm335_vm1, %v730_v32 }
 0x1c3   : > { %v735_v34 = vpop.f32.mrb[0].mxu1 }
 0x1c4   : > { %v534_v35 = vadd.f32 %v735_v34, %v946_v2  ;;  %v454_v36 = vpop.f32.mrb[1].mxu1 }
 0x1c5   : > { %v533_v37 = vadd.f32 %v454_v36, %v943_v1 }
 0x1c6   : > { %550 = vst [vmem:[%s1030_s8 + $0x8] sm:$0xff] %v534_v35 }
 0x1c7   : > { %549 = vst [vmem:[%s1030_s8] sm:$0xff] %v533_v37  ;;  %v738_v38 = vpop.f32.mrb[2].mxu1 }
 0x1c8   : > { %v536_v39 = vadd.f32 %v738_v38, %v955_v4  ;;  %v464_v40 = vpop.f32.mrb[3].mxu1 }
 0x1c9   : > { %v535_v41 = vadd.f32 %v464_v40, %v949_v3 }
 0x1ca   : > { %552 = vst [vmem:[%s1030_s8 + $0x18] sm:$0xff] %v536_v39 }
 0x1cb   : > { %551 = vst [vmem:[%s1030_s8 + $0x10] sm:$0xff] %v535_v41  ;;  %v741_v42 = vpop.f32.mrb[4].mxu1 }
 0x1cc   : > { %v538_v43 = vadd.f32 %v741_v42, %v963_v6  ;;  %v474_v44 = vpop.f32.mrb[5].mxu1 }
 0x1cd   : > { %v537_v45 = vadd.f32 %v474_v44, %v958_v5 }
 0x1ce   : > { %554 = vst [vmem:[%s1030_s8 + $0x28] sm:$0xff] %v538_v43 }
 0x1cf   : > { %553 = vst [vmem:[%s1030_s8 + $0x20] sm:$0xff] %v537_v45  ;;  %v744_v46 = vpop.f32.mrb[6].mxu1 }
 0x1d0   : > { %v540_v47 = vadd.f32 %v744_v46, %v971_v8  ;;  %v484_v48 = vpop.f32.mrb[7].mxu1 }
 0x1d1   : > { %v539_v49 = vadd.f32 %v484_v48, %v966_v7 }
 0x1d2   : > { %556 = vst [vmem:[%s1030_s8 + $0x38] sm:$0xff] %v540_v47 }
 0x1d3   : > { %555 = vst [vmem:[%s1030_s8 + $0x30] sm:$0xff] %v539_v49  ;;  %v747_v50 = vpop.f32.mrb[8].mxu1 }
 0x1d4   : > { %v542_v51 = vadd.f32 %v747_v50, %v979_v10  ;;  %v494_v52 = vpop.f32.mrb[9].mxu1 }
 0x1d5   : > { %v541_v53 = vadd.f32 %v494_v52, %v974_v9 }
 0x1d6   : > { %558 = vst [vmem:[%s1030_s8 + $0x48] sm:$0xff] %v542_v51 }
 0x1d7   : > { %557 = vst [vmem:[%s1030_s8 + $0x40] sm:$0xff] %v541_v53  ;;  %v750_v54 = vpop.f32.mrb[10].mxu1 }
 0x1d8   : > { %v544_v55 = vadd.f32 %v750_v54, %v987_v12  ;;  %v504_v56 = vpop.f32.mrb[11].mxu1 }
 0x1d9   : > { %v543_v57 = vadd.f32 %v504_v56, %v982_v11 }
 0x1da   : > { %560 = vst [vmem:[%s1030_s8 + $0x58] sm:$0xff] %v544_v55 }
 0x1db   : > { %559 = vst [vmem:[%s1030_s8 + $0x50] sm:$0xff] %v543_v57  ;;  %v753_v58 = vpop.f32.mrb[12].mxu1 }
 0x1dc   : > { %v546_v59 = vadd.f32 %v753_v58, %v995_v14  ;;  %v514_v60 = vpop.f32.mrb[13].mxu1 }
 0x1dd   : > { %v545_v61 = vadd.f32 %v514_v60, %v990_v13 }
 0x1de   : > { %562 = vst [vmem:[%s1030_s8 + $0x68] sm:$0xff] %v546_v59 }
 0x1df   : > { %561 = vst [vmem:[%s1030_s8 + $0x60] sm:$0xff] %v545_v61  ;;  %v756_v62 = vpop.f32.mrb[14].mxu1 }
 0x1e0   : > { %v548_v63 = vadd.f32 %v756_v62, %v1003_v16  ;;  %v524_v0 = vpop.f32.mrb[15].mxu1 }
 0x1e1   : > { %v547_v1 = vadd.f32 %v524_v0, %v998_v15 }
 0x1e2   : > { %564 = vst [vmem:[%s1030_s8 + $0x78] sm:$0xff] %v548_v63 }
 0x1e3   : > { %563 = vst [vmem:[%s1030_s8 + $0x70] sm:$0xff] %v547_v1 }
 0x1e4   : > { %811 = shalt.err (!%p808_p3)
}
 0x1e5   : > { %s812_s27 = scalar_lea.hbm %s1064_s19, 2048  ;;  %s816_s30 = scalar_lea.hbm %s1117_s3, 4096 }
 0x1e6   : > { %p813_p4 = scmp.ne.s32.totalorder %s1064_s19, %s812_s27  ;;  %p817_p9 = scmp.lt.u32.totalorder %s1064_s19, %s1117_s3 }
 0x1e7   : > { %p818_p10 = scmp.lt.u32.totalorder %s816_s30, %s812_s27  ;;  %p820_p12 = scmp.lt.u32.totalorder %s812_s27, %s1064_s19 }
 0x1e8   : > { %p814_p7 = pnand %p813_p4, %p923_p5 }
 0x1e9   : > { %p819_p11 = por %p818_p10, %p817_p9 }
 0x1ea   : > { %p815_p8 = pneg %p814_p7 }
 0x1eb   : > { %p821_p13 = por %p820_p12, %p819_p11 }
 0x1ed   : > { %p822_p0 = pnand %p821_p13, %p815_p8 }
 0x1ef   : > { %825 = shalt.err (!%p822_p0)
}
 0x1f0   : > { %s863_s6 = smov 128   ;;  %s864_s7 = smov 8  }
 0x1f1   : > { %757 = dma.vmem_to_hbm [thread:$0]  (%p923_p5), %s1066_s10, 2048, %s1064_s19, %s1073_s16, %s863_s6, %s863_s6, %s864_s7  }
 0x1f2 PF: > { %p763_p1 = scmp.ge.s32.totalorder %s860_s15, 2  ;;  %s594_s8 = sand.u32 1, %s848_s12  }
 0x1f3   : > { %s595_s9 = scalar_lea.sflag [#allocation3], %s594_s8 }
 0x1f4   : > { %p760_p2 = pnand %p763_p1, %p927_p6 }
 0x1f6   : > { %843 = dma.done.wait (!%p760_p2), %s595_s9, 2048  }
 0x1f7   : > { %845 = vsyncadd (!%p760_p2), %s595_s9, 4294965248  ;;  %p13_p3 = scmp.ge.s32.totalorder %s910_s18, 4   ;;  %s1120_s12 = smov %s852_s13 }
 0x1f8   : > { %s1121_s13 = smov %s856_s14  ;;  %s1122_s14 = smov %s921_s21 }
 0x1f9   : > { %s1123_s15 = smov %s910_s18  ;;  %15 = sbr.rel (!%p13_p3) target bundleno = 3 (0x3), region = 67 }
 0x200   :  { %600 = vsyncpa [#allocation3], 1 }
 0x201   :  { %602 = vsyncpa [#allocation3 + $0x1], 1 }

</bundles_post_ra>
